<compile_context>
chip_gen: v7x
topology: tpu7x:2x2x1
jax: 0.10.0
libtpu: 0.0.40
codegen_flags: <defaults>
</compile_context>

<pallas_src>
import functools

import jax
import jax.numpy as jnp
from jax.experimental import pallas as pl
from jax.experimental.pallas import tpu as pltpu


def _segment_sum_kernel(xT_ref, batch_ref, sums_ref, counts_ref, *,
                        n_total, tile_n, steps_per_split, fully_tiled):
    """Accumulate per-graph feature sums and node counts for one node tile."""
    c = pl.program_id(0)             # split index  ("parallel": megacore axis)
    k = pl.program_id(1)             # step in split ("arbitrary": reduction)
    t = c * steps_per_split + k      # logical tile index along the node axis
    B = sums_ref.shape[0]

    @pl.when(k == 0)
    def _init():
        sums_ref[...] = jnp.zeros_like(sums_ref)
        counts_ref[...] = jnp.zeros_like(counts_ref)

    batch = batch_ref[...]                                      # [1, tile_n]
    gids = jax.lax.broadcasted_iota(jnp.int32, (B, tile_n), 0)  # [B, tile_n]

    def _accumulate(onehot, x_tile):
        # Segment sums: [B, tile_n] x [Fn, tile_n] contracted over tile_n (MXU).
        sums_ref[...] += jax.lax.dot_general(
            onehot, x_tile, (((1,), (1,)), ((), ())),
            preferred_element_type=jnp.float32)
        # Node counts: lane-reduce of the one-hot (XLU slot; no ones column).
        counts_ref[...] += jnp.sum(onehot, axis=1, keepdims=True)

    def _fast_body():
        onehot = (gids == batch).astype(jnp.float32)
        _accumulate(onehot, xT_ref[...])

    if fully_tiled:
        # Every logical tile is fully in-bounds: no masking anywhere.
        _fast_body()
    else:
        full_tile = (t + 1) * tile_n <= n_total

        @pl.when(full_tile)
        def _fast():
            _fast_body()

        @pl.when(jnp.logical_not(full_tile))
        def _masked():
            # Lane-dense [1, tile_n] validity mask (not a [tile_n, 1] sublane
            # mask) -- ~16x fewer VPU ops, and it only runs on partial tiles.
            col = jax.lax.broadcasted_iota(jnp.int32, (1, tile_n), 1)
            valid = (col + t * tile_n) < n_total                # [1, tile_n]
            onehot = jnp.logical_and(gids == batch, valid).astype(jnp.float32)
            # Also select-zero x so padded garbage (NaN/Inf) can't hit the MXU.
            x_tile = jnp.where(valid, xT_ref[...], 0.0)
            _accumulate(onehot, x_tile)


def _finalize_kernel(sums_ref, counts_ref, u_ref, w1u_ref, w1x_ref,
                     b1_ref, w2_ref, b2_ref, out_ref):
    sums = jnp.sum(sums_ref[...], axis=0)        # [B, Fn]  reduce split partials
    counts = jnp.sum(counts_ref[...], axis=0)    # [B, 1]
    mean = sums * pl.reciprocal(jnp.maximum(counts, 1.0), approx=False)

    # Linear(Fg+Fn, H) on cat([u, mean]) == u @ W1u + mean @ W1x + b1 (exact).
    h = (jnp.dot(u_ref[...], w1u_ref[...], preferred_element_type=jnp.float32)
         + jnp.dot(mean, w1x_ref[...], preferred_element_type=jnp.float32)
         + b1_ref[...])
    h = jnp.where(h > 0, h, jnp.exp(h) - 1.0)    # ELU(alpha=1)
    out = jnp.dot(h, w2_ref[...], preferred_element_type=jnp.float32) + b2_ref[...]
    out_ref[...] = out.astype(out_ref.dtype)


def global_model_forward(x, batch, u, w1, b1, w2, b2, *, tile_n=None,
                         num_splits=2):
    """x:[N,Fn] f32, batch:[N] int, u:[B,Fg] f32,
       w1:[H, Fg+Fn] (torch layout), b1:[H], w2:[C,H], b2:[C]."""
    N, Fn = x.shape
    B, Fg = u.shape
    H = w1.shape[0]
    C = w2.shape[0]

    x = jnp.asarray(x, jnp.float32)
    u = jnp.asarray(u, jnp.float32)
    # Feature-major node stream: the (huge) node axis becomes the lane axis.
    # TODO(synk): produce x feature-major upstream to avoid this HBM transpose.
    xT = x.T                                            # [Fn, N]
    batch2d = jnp.asarray(batch, jnp.int32).reshape(1, N)

    # Torch Linear computes y = x @ W.T + b; pre-transpose and split W1.
    w1u = jnp.asarray(w1[:, :Fg].T, jnp.float32)        # [Fg, H]
    w1x = jnp.asarray(w1[:, Fg:].T, jnp.float32)        # [Fn, H]
    w2t = jnp.asarray(w2.T, jnp.float32)                # [H, C]
    b1r = jnp.asarray(b1, jnp.float32).reshape(1, H)
    b2r = jnp.asarray(b2, jnp.float32).reshape(1, C)

    # Tile the node axis.  A feature-major [Fn, tile_n] f32 block is
    # tile_n * 8 * 4 bytes in VMEM (1 MiB at tile_n=32768) per pipeline buffer;
    # the in-kernel one-hot is [B, tile_n] f32, so cap tile_n by a one-hot
    # budget when B is large.  Defaults fit scoped VMEM on v5e/v6e/v7x.
    b_pad = max(8, B)
    tile_cap = min(32768, max(512, (4 * 1024 * 1024) // (4 * b_pad)))
    tile_cap = (tile_cap // 128) * 128
    if tile_n is None:
        tile_n = N if N <= tile_cap else tile_cap

    grid_n = pl.cdiv(N, tile_n)                          # real node tiles
    num_splits = max(1, min(num_splits, grid_n))         # megacore split (v7x)
    steps_per_split = pl.cdiv(grid_n, num_splits)
    fully_tiled = (num_splits * steps_per_split * tile_n == N)

    def node_block(c, k):
        # Clamp so logical tiles past the last real tile re-read the last
        # block; their validity mask is all-false, so they contribute nothing.
        return jnp.minimum(c * steps_per_split + k, grid_n - 1)

    stream_kernel = functools.partial(
        _segment_sum_kernel, n_total=N, tile_n=tile_n,
        steps_per_split=steps_per_split, fully_tiled=fully_tiled)

    sums_parts, counts_parts = pl.pallas_call(
        stream_kernel,
        out_shape=(jax.ShapeDtypeStruct((num_splits, B, Fn), jnp.float32),
                   jax.ShapeDtypeStruct((num_splits, B, 1), jnp.float32)),
        grid=(num_splits, steps_per_split),
        in_specs=[
            pl.BlockSpec((Fn, tile_n), lambda c, k: (0, node_block(c, k))),
            pl.BlockSpec((1, tile_n), lambda c, k: (0, node_block(c, k))),
        ],
        out_specs=(
            pl.BlockSpec((None, B, Fn), lambda c, k: (c, 0, 0)),
            pl.BlockSpec((None, B, 1), lambda c, k: (c, 0, 0)),
        ),
        compiler_params=pltpu.CompilerParams(
            dimension_semantics=("parallel", "arbitrary"),
            vmem_limit_bytes=32 * 1024 * 1024),
    )(xT, batch2d)

    return pl.pallas_call(
        _finalize_kernel,
        out_shape=jax.ShapeDtypeStruct((B, C), jnp.float32),
        grid=(1,),
        in_specs=[
            pl.BlockSpec((num_splits, B, Fn), lambda i: (0, 0, 0)),
            pl.BlockSpec((num_splits, B, 1), lambda i: (0, 0, 0)),
            pl.BlockSpec((B, Fg), lambda i: (0, 0)),
            pl.BlockSpec((Fg, H), lambda i: (0, 0)),
            pl.BlockSpec((Fn, H), lambda i: (0, 0)),
            pl.BlockSpec((1, H), lambda i: (0, 0)),
            pl.BlockSpec((H, C), lambda i: (0, 0)),
            pl.BlockSpec((1, C), lambda i: (0, 0)),
        ],
        out_specs=pl.BlockSpec((B, C), lambda i: (0, 0)),
        compiler_params=pltpu.CompilerParams(
            dimension_semantics=("arbitrary",)),
    )(sums_parts, counts_parts, u, w1u, w1x, b1r, w2t, b2r)


def _reference(x, batch, u, w1, b1, w2, b2):
    """Plain-JAX reference mirroring the PyTorch forward."""
    B = u.shape[0]
    sums = jax.ops.segment_sum(x, batch, num_segments=B)
    counts = jax.ops.segment_sum(jnp.ones((x.shape[0],)), batch, num_segments=B)
    mean = sums / jnp.maximum(counts, 1.0)[:, None]
    cat = jnp.concatenate([u, mean], axis=1)
    h = cat @ w1.T + b1
    h = jnp.where(h > 0, h, jnp.exp(h) - 1.0)
    return h @ w2.T + b2


if __name__ == "__main__":
    num_node_features = 4
    num_global_features = 3
    out_channels = 5
    hidden = 64

    key = jax.random.PRNGKey(0)
    kw1, kb1, kw2, kb2, k1, k2, k3, k4, k5 = jax.random.split(key, 9)

    fan_in1 = num_global_features + num_node_features
    w1 = jax.random.normal(kw1, (hidden, fan_in1), jnp.float32) * (1.0 / fan_in1 ** 0.5)
    b1 = jax.random.normal(kb1, (hidden,), jnp.float32) * 0.01
    w2 = jax.random.normal(kw2, (out_channels, hidden), jnp.float32) * (1.0 / hidden ** 0.5)
    b2 = jax.random.normal(kb2, (out_channels,), jnp.float32) * 0.01

    # Case 1: toy sizes (single tile, single split, fully-tiled fast path only).
    N1, B1 = 8, 2
    x1 = jax.random.normal(k1, (N1, num_node_features), jnp.float32)
    u1 = jax.random.normal(k2, (B1, num_global_features), jnp.float32)
    batch1 = jnp.array([0, 0, 0, 0, 1, 1, 1, 1], dtype=jnp.int32)

    out1 = jax.block_until_ready(global_model_forward(x1, batch1, u1, w1, b1, w2, b2))
    ref1 = _reference(x1, batch1, u1, w1, b1, w2, b2)
    assert out1.shape == (B1, out_channels)
    assert jnp.allclose(out1, ref1, atol=1e-4, rtol=1e-4), "case1 mismatch vs reference"

    # Case 2: multi-tile stream, 2-way split (parallel axis), partial last tile,
    # and a fully-out-of-range logical tile (exercises clamping + masked path).
    N2, B2 = 520, 3
    x2 = jax.random.normal(k3, (N2, num_node_features), jnp.float32)
    u2 = jax.random.normal(k4, (B2, num_global_features), jnp.float32)
    batch2 = jnp.sort(jax.random.randint(k5, (N2,), 0, B2)).astype(jnp.int32)

    out2 = jax.block_until_ready(
        global_model_forward(x2, batch2, u2, w1, b1, w2, b2, tile_n=256))
    ref2 = _reference(x2, batch2, u2, w1, b1, w2, b2)
    assert out2.shape == (B2, out_channels)
    assert jnp.allclose(out2, ref2, atol=1e-4, rtol=1e-4), "case2 mismatch vs reference"

    print("KERNEL_OK")
</pallas_src>

<mosaic_0001>
module attributes {stable_mosaic.version = 11 : i64} {
  func.func @_segment_sum_kernel(%arg0: i32, %arg1: i32, %arg2: memref<4x8xf32, #tpu.memory_space<vmem>>, %arg3: memref<1x8xi32, #tpu.memory_space<vmem>>, %arg4: memref<1x2x4xf32, #tpu.memory_space<vmem>>, %arg5: memref<1x2x1xf32, #tpu.memory_space<vmem>>) attributes {dimension_semantics = [#tpu.dimension_semantics<parallel>, #tpu.dimension_semantics<arbitrary>], iteration_bounds = array<i64: 1, 1>, scalar_prefetch = 0 : i64, scratch_operands = 0 : i64, tpu.core_type = #tpu.core_type<tc>, window_params = [{transform_indices = @transform_0, window_bounds = array<i64: 4, 8>}, {transform_indices = @transform_1, window_bounds = array<i64: 1, 8>}, {transform_indices = @transform_2, window_bounds = array<i64: 1, 2, 4>}, {transform_indices = @transform_3, window_bounds = array<i64: 1, 2, 1>}]} {
    %c0_i32 = arith.constant 0 : i32
    %0 = arith.cmpi eq, %arg1, %c0_i32 : i32
    %1 = arith.extui %0 : i1 to i32
    %c0_i32_0 = arith.constant 0 : i32
    %2 = arith.cmpi ne, %1, %c0_i32_0 : i32
    scf.if %2 {
      %cst_17 = arith.constant 0.000000e+00 : f32
      %25 = vector.broadcast %cst_17 : f32 to vector<2x4xf32>
      %c0_18 = arith.constant 0 : index
      %c0_19 = arith.constant 0 : index
      %c0_20 = arith.constant 0 : index
      %26 = vector.load %arg4[%c0_18, %c0_19, %c0_20] : memref<1x2x4xf32, #tpu.memory_space<vmem>>, vector<1x2x4xf32>
      %27 = vector.shape_cast %26 : vector<1x2x4xf32> to vector<2x4xf32>
      %28 = vector.shape_cast %25 : vector<2x4xf32> to vector<1x2x4xf32>
      tpu.vector_store %arg4[%c0_18, %c0_19, %c0_20], %28 {strides = array<i32>} : memref<1x2x4xf32, #tpu.memory_space<vmem>>, vector<1x2x4xf32>,
      %cst_21 = arith.constant 0.000000e+00 : f32
      %29 = vector.broadcast %cst_21 : f32 to vector<2x1xf32>
      %c0_22 = arith.constant 0 : index
      %c0_23 = arith.constant 0 : index
      %c0_24 = arith.constant 0 : index
      %30 = vector.load %arg5[%c0_22, %c0_23, %c0_24] : memref<1x2x1xf32, #tpu.memory_space<vmem>>, vector<1x2x1xf32>
      %31 = vector.shape_cast %30 : vector<1x2x1xf32> to vector<2x1xf32>
      %32 = vector.shape_cast %29 : vector<2x1xf32> to vector<1x2x1xf32>
      tpu.vector_store %arg5[%c0_22, %c0_23, %c0_24], %32 {strides = array<i32>} : memref<1x2x1xf32, #tpu.memory_space<vmem>>, vector<1x2x1xf32>,
    } else {
    }
    %c0 = arith.constant 0 : index
    %c0_1 = arith.constant 0 : index
    %3 = vector.load %arg3[%c0, %c0_1] : memref<1x8xi32, #tpu.memory_space<vmem>>, vector<1x8xi32>
    %4 = tpu.iota {dimensions = array<i32: 0>} : vector<2x8xi32>
    %5 = vector.broadcast %3 : vector<1x8xi32> to vector<2x8xi32>
    %6 = arith.cmpi eq, %4, %5 : vector<2x8xi32>
    %7 = arith.extui %6 : vector<2x8xi1> to vector<2x8xi32>
    %8 = arith.sitofp %7 : vector<2x8xi32> to vector<2x8xf32>
    %c0_2 = arith.constant 0 : index
    %c0_3 = arith.constant 0 : index
    %9 = vector.load %arg2[%c0_2, %c0_3] : memref<4x8xf32, #tpu.memory_space<vmem>>, vector<4x8xf32>
    %c0_4 = arith.constant 0 : index
    %c0_5 = arith.constant 0 : index
    %c0_6 = arith.constant 0 : index
    %10 = vector.load %arg4[%c0_4, %c0_5, %c0_6] : memref<1x2x4xf32, #tpu.memory_space<vmem>>, vector<1x2x4xf32>
    %11 = vector.shape_cast %10 : vector<1x2x4xf32> to vector<2x4xf32>
    %cst = arith.constant dense<0.000000e+00> : vector<2x4xf32>
    %12 = tpu.matmul %8, %9, %cst {dimension_numbers = #tpu.dot_dimension_numbers<[1], [1], [0], [0], [0, 0, 1, 0], [], []>} : vector<2x8xf32>, vector<4x8xf32>, vector<2x4xf32> -> vector<2x4xf32>
    %13 = arith.addf %11, %12 : vector<2x4xf32>
    %c0_7 = arith.constant 0 : index
    %c0_8 = arith.constant 0 : index
    %c0_9 = arith.constant 0 : index
    %14 = vector.load %arg4[%c0_7, %c0_8, %c0_9] : memref<1x2x4xf32, #tpu.memory_space<vmem>>, vector<1x2x4xf32>
    %15 = vector.shape_cast %14 : vector<1x2x4xf32> to vector<2x4xf32>
    %16 = vector.shape_cast %13 : vector<2x4xf32> to vector<1x2x4xf32>
    tpu.vector_store %arg4[%c0_7, %c0_8, %c0_9], %16 {strides = array<i32>} : memref<1x2x4xf32, #tpu.memory_space<vmem>>, vector<1x2x4xf32>,
    %c0_10 = arith.constant 0 : index
    %c0_11 = arith.constant 0 : index
    %c0_12 = arith.constant 0 : index
    %17 = vector.load %arg5[%c0_10, %c0_11, %c0_12] : memref<1x2x1xf32, #tpu.memory_space<vmem>>, vector<1x2x1xf32>
    %18 = vector.shape_cast %17 : vector<1x2x1xf32> to vector<2x1xf32>
    %cst_13 = arith.constant dense<0.000000e+00> : vector<2xf32>
    %19 = vector.multi_reduction <add>, %8, %cst_13 [1] : vector<2x8xf32> to vector<2xf32>
    %20 = vector.shape_cast %19 : vector<2xf32> to vector<2x1xf32>
    %21 = arith.addf %18, %20 : vector<2x1xf32>
    %c0_14 = arith.constant 0 : index
    %c0_15 = arith.constant 0 : index
    %c0_16 = arith.constant 0 : index
    %22 = vector.load %arg5[%c0_14, %c0_15, %c0_16] : memref<1x2x1xf32, #tpu.memory_space<vmem>>, vector<1x2x1xf32>
    %23 = vector.shape_cast %22 : vector<1x2x1xf32> to vector<2x1xf32>
    %24 = vector.shape_cast %21 : vector<2x1xf32> to vector<1x2x1xf32>
    tpu.vector_store %arg5[%c0_14, %c0_15, %c0_16], %24 {strides = array<i32>} : memref<1x2x1xf32, #tpu.memory_space<vmem>>, vector<1x2x1xf32>,
    return
  }
  func.func @transform_0(%arg0: i32, %arg1: i32) -> (i32, i32) {
    %c1_i32 = arith.constant 1 : i32
    %0 = arith.muli %arg0, %c1_i32 : i32
    %1 = arith.addi %0, %arg1 : i32
    %c0_i32 = arith.constant 0 : i32
    %2 = arith.minsi %1, %c0_i32 : i32
    %c0_i32_0 = arith.constant 0 : i32
    %c0_i32_1 = arith.constant 0 : i32
    return %c0_i32_0, %2 : i32, i32
  }
  func.func @transform_1(%arg0: i32, %arg1: i32) -> (i32, i32) {
    %c1_i32 = arith.constant 1 : i32
    %0 = arith.muli %arg0, %c1_i32 : i32
    %1 = arith.addi %0, %arg1 : i32
    %c0_i32 = arith.constant 0 : i32
    %2 = arith.minsi %1, %c0_i32 : i32
    %c0_i32_0 = arith.constant 0 : i32
    %c0_i32_1 = arith.constant 0 : i32
    return %c0_i32_0, %2 : i32, i32
  }
  func.func @transform_2(%arg0: i32, %arg1: i32) -> (i32, i32, i32) {
    %c0_i32 = arith.constant 0 : i32
    %c0_i32_0 = arith.constant 0 : i32
    %c0_i32_1 = arith.constant 0 : i32
    return %arg0, %c0_i32, %c0_i32_0 : i32, i32, i32
  }
  func.func @transform_3(%arg0: i32, %arg1: i32) -> (i32, i32, i32) {
    %c0_i32 = arith.constant 0 : i32
    %c0_i32_0 = arith.constant 0 : i32
    %c0_i32_1 = arith.constant 0 : i32
    return %arg0, %c0_i32, %c0_i32_0 : i32, i32, i32
  }
}

</mosaic_0001>

<bundles_post_ra>
// kernel: tpu_custom_call.1
= control target key start
LH: loop header
LB: loop body
LE: loop exit
PB: predicated region body
PF: predicated region fallthrough
CT: control target
= control target key end

     0   :  { %9 = vsyncpa [#allocation3], 0  ;;  %s317_s0 = inlined_call_operand.hbm [shape: f32[4,8], index: 0, kind: input, shape index: {}]   ;;  %s318_s1 = inlined_call_operand.vmem [shape: s32[1,8], index: 1, kind: input, shape index: {}]   ;;  %s319_s2 = inlined_call_operand.hbm [shape: f32[1,2,4], index: 2, kind: output, shape index: {0}]   ;;  %s320_s3 = inlined_call_operand.vmem [shape: f32[1,2,1], index: 3, kind: output, shape index: {1}]  }
   0x1   :  { %10 = vsyncpa [#allocation4], 0  ;;  %s253_s12 = smov [#allocation2]   ;;  %s205_s16 = scalar_lea.hbm %s317_s0, 64 }
   0x2   :  { %s22_s13 = sshll.u32 %s253_s12, 4  ;;  %p206_p0 = scmp.ne.s32.totalorder %s317_s0, %s205_s16  ;;  %s23_s13 = int_to_ptr.vmem [resolvable:$true] %s22_s13 }
   0x3   :  { %p209_p1 = scmp.lt.u32.totalorder %s205_s16, %s317_s0 }
   0x5   :  { %p211_p2 = pnand %p209_p1, %p206_p0 }
   0x7   :  { %214 = shalt.err (!%p211_p2)
}
   0x8   :  { %s215_s21 = scalar_lea.vmem %s23_s13, 64  ;;  %p220_p4 = scmp.lt.s32.totalorder %s23_s13, %s23_s13 }
   0x9   :  { %p216_p3 = scmp.ne.s32.totalorder %s23_s13, %s215_s21  ;;  %p221_p5 = scmp.lt.s32.totalorder %s215_s21, %s215_s21 }
   0xb   :  { %p222_p6 = por %p221_p5, %p220_p4 }
   0xd   :  { %p223_p7 = pnand %p222_p6, %p216_p3 }
   0xf   :  { %226 = shalt.err (!%p223_p7)
}
  0x10   :  { %25 = dma.hbm_to_vmem [thread:$0]  %s317_s0, 64, %s23_s13, [#allocation3]  }
  0x11   :  { %249 = dma.done.wait [#allocation3], 64  }
  0x12   :  { %250 = vsyncadd [#allocation3], 4294967232  ;;  %vm62_vm0 = vcmask 25600   ;;  %vm64_vm1 = vcmask 1024   ;;  %v254_v0 = vmov 0.0   ;;  %v67_v1 = vlaneseq }
  0x13   :  { %63 = vst.msk [vmem:[#allocation5] sm:$0x3] %vm62_vm0, %v254_v0  ;;  %196 = vmatprep.subr.mxu0 %v254_v0  ;;  %vm255_vm2 = vmmov 0   ;;  %vm78_vm3 = vcmask 64512   ;;  %v76_v3 = vld [vmem:[#allocation2] sm:$0xf] }
  0x14   :  { %65 = vst.msk [vmem:[%s320_s3] sm:$0x3] %vm64_vm1, %v254_v0  ;;  %198 = vmatprep.mubr.msk.f32.mxu0 %vm255_vm2, %v254_v0  ;;  %v68_v2 = vshrl.u32 %v67_v1, 7  ;;  %v190_v4 = vld [vmem:[%s318_s1] ss:$0 sm:$0xff]  ;;  %vm159_vm4 = vcmask 58368   ;;  %197 = vmatpush3.xpose.msk.msra.mxu0 %vm78_vm3, %v76_v3 }
  0x15   :  { %s256_s1 = smov [#allocation5]  }
  0x16   :  { %vm73_vm5 = vcmp.eq.s32.totalorder %v68_v2, %v190_v4  ;;  %s172_s4 = sshll.u32 %s256_s1, 4  ;;  %s173_s4 = int_to_ptr.vmem [resolvable:$true] %s172_s4 }
  0x17   :  { %v191_v5 = vsel %vm73_vm5, 1.0, %v254_v0  ;;  %s227_s5 = scalar_lea.vmem %s173_s4, 32  ;;  %p232_p9 = scmp.lt.s32.totalorder %s173_s4, %s173_s4 }
  0x18   :  { %v160_v6 = vsel %vm159_vm4, %v191_v5, 0.0  ;;  %199 = vmatmul.mubr.msk.f32.vlgmr.msra.gmra.mrb[0].mxu0 %vm78_vm3, %v191_v5  ;;  %p228_p8 = scmp.ne.s32.totalorder %s173_s4, %s227_s5  ;;  %p233_p10 = scmp.lt.s32.totalorder %s227_s5, %s227_s5 }
  0x19   :  { %161 = vadd.xlane.f32.xlu0 %v160_v6 }
  0x1a   :  { %v77_v10 = vld [vmem:[#allocation5] sm:$0x3]  ;;  %p234_p11 = por %p233_p10, %p232_p9 }
  0x1b   :  { %v158_v7 = vld [vmem:[%s320_s3] sm:$0x3] }
  0x1c   :  { %p235_p12 = pnand %p234_p11, %p228_p8 }
  0xa6   :  { %v162_v8 = vpop.xlane.xlu0 %161 }
  0xa7   :  { %v163_v9 = vadd.f32 %v162_v8, %v158_v7 }
  0xa9   :  { %165 = vst.msk [vmem:[%s320_s3] sm:$0x3] %vm64_vm1, %v163_v9 }
  0xeb   :  { %v151_v11 = vpop.f32.mrb[0].mxu0 }
  0xec   :  { %v155_v12 = vadd.f32 %v151_v11, %v77_v10  ;;  %v200_v13 = vpop.f32.mrb[1].mxu0 }
  0xee   :  { %157 = vst.msk [vmem:[#allocation5] sm:$0x3] %vm62_vm0, %v155_v12 }
  0xef   :  { %238 = shalt.err (!%p235_p12)
}
  0xf0   :  { %s239_s3 = scalar_lea.hbm %s319_s2, 32 }
  0xf1   :  { %p240_p13 = scmp.ne.s32.totalorder %s319_s2, %s239_s3  ;;  %p243_p0 = scmp.lt.u32.totalorder %s239_s3, %s319_s2 }
  0xf3   :  { %p245_p1 = pnand %p243_p0, %p240_p13 }
  0xf5   :  { %248 = shalt.err (!%p245_p1)
}
  0xf6   :  { %175 = dma.vmem_to_hbm [thread:$0]  %s173_s4, 32, %s319_s2, [#allocation4]  }
  0xf7   :  { %251 = dma.done.wait [#allocation4], 32  }
  0xf8   :  { %252 = vsyncadd [#allocation4], 4294967264 }
  0xf9   :  { %183 = vsyncpa [#allocation3], 1 }
  0xfa   :  { %184 = vsyncpa [#allocation4], 1 }

</bundles_post_ra>
